<compile_context>
chip_gen: v7x
topology: tpu7x:2x2x1
jax: 0.10.0
libtpu: 0.0.40
codegen_flags: <defaults>
</compile_context>

<pallas_src>
import math
import functools

import jax
import jax.numpy as jnp
from jax.experimental import pallas as pl
from jax.experimental.pallas import tpu as pltpu


# ----------------------------- Pallas kernels ------------------------------ #
def _noisy_linear_train_kernel(x_ref, ein_ref, wmu_ref, wsig_ref, eout_ref,
                               bmu_ref, bsig_ref, o_ref, acc_mu, acc_sig):
    """acc_mu += x @ Wmu^T ; acc_sig += (x*eps_in) @ Wsig^T
    finalize: o = acc_mu + acc_sig * eps_out + (b_mu + b_sigma * eps_out)."""
    k = pl.program_id(2)

    @pl.when(k == 0)
    def _():
        acc_mu[...] = jnp.zeros_like(acc_mu)
        acc_sig[...] = jnp.zeros_like(acc_sig)

    x = x_ref[...]
    acc_mu[...] += jnp.dot(x, wmu_ref[...], preferred_element_type=jnp.float32)

    # Noise product in f32; only the MXU operand is cast to the weight dtype.
    xn = (x.astype(jnp.float32) * ein_ref[...]).astype(wsig_ref.dtype)
    acc_sig[...] += jnp.dot(xn, wsig_ref[...],
                            preferred_element_type=jnp.float32)

    @pl.when(k == pl.num_programs(2) - 1)
    def _():
        eout = eout_ref[...]                         # (1, tn) f32
        bias = bmu_ref[...] + bsig_ref[...] * eout   # noisy bias, f32
        o_ref[...] = (acc_mu[...] + acc_sig[...] * eout + bias).astype(o_ref.dtype)


def _noisy_linear_eval_kernel(x_ref, wmu_ref, bmu_ref, o_ref, acc_ref):
    k = pl.program_id(2)

    @pl.when(k == 0)
    def _():
        acc_ref[...] = jnp.zeros_like(acc_ref)

    acc_ref[...] += jnp.dot(x_ref[...], wmu_ref[...],
                            preferred_element_type=jnp.float32)

    @pl.when(k == pl.num_programs(2) - 1)
    def _():
        o_ref[...] = (acc_ref[...] + bmu_ref[...]).astype(o_ref.dtype)


# ------------------------------- helpers ------------------------------------ #
def _round_up(x, m):
    return ((x + m - 1) // m) * m


def _pick_tile(padded, max_tile, align):
    """Largest multiple of `align` that divides `padded` and is <= max_tile."""
    units = padded // align
    max_units = max(1, min(units, max_tile // align))
    for u in range(max_units, 0, -1):
        if units % u == 0:
            return u * align
    return align


def _vmem_budget_bytes():
    # Generation-aware: large on v5e/v6e (128 MiB physical), capped for v7x
    # (64 MiB per TC).  Falls back to a conservative value if the query fails.
    try:
        cap = pltpu.get_tpu_info().vmem_capacity_bytes
        return int(min(cap * 0.8, 100 * 1024 * 1024))
    except Exception:
        return 48 * 1024 * 1024


# ------------------------ one-time parameter prep --------------------------- #
def prepare_noisy_linear_params(params, compute_dtype=jnp.float32):
    """Hoisted preprocessing: (out,in) -> (in,out) transpose, pad K/N to 128
    multiples, cast weights to compute_dtype (e.g. bf16).  Done ONCE, not per
    forward call, so the forward streams weights straight from HBM."""
    w_mu, w_sigma = params["w_mu"], params["w_sigma"]
    b_mu, b_sigma = params["b_mu"], params["b_sigma"]
    eps_in, eps_out = params["eps_in"], params["eps_out"]
    N, K = w_mu.shape
    Kp, Np = _round_up(K, 128), _round_up(N, 128)

    def pad2(a, r, c):
        return jnp.pad(a, ((0, r - a.shape[0]), (0, c - a.shape[1])))

    return dict(
        w_mu_t=pad2(w_mu.T.astype(compute_dtype), Kp, Np),       # (Kp, Np)
        w_sigma_t=pad2(w_sigma.T.astype(compute_dtype), Kp, Np), # (Kp, Np)
        eps_in_row=pad2(eps_in.reshape(1, K).astype(jnp.float32), 1, Kp),
        eps_out_row=pad2(eps_out.reshape(1, N).astype(jnp.float32), 1, Np),
        b_mu_row=pad2(b_mu.reshape(1, N).astype(jnp.float32), 1, Np),
        b_sigma_row=pad2(b_sigma.reshape(1, N).astype(jnp.float32), 1, Np),
    )


# --------------------------------- forward ---------------------------------- #
@functools.partial(jax.jit, static_argnames=("out_features", "training",
                                             "tile_m", "tile_n", "tile_k"))
def noisy_linear_forward(x, prep, out_features, training=True, *,
                         tile_m=512, tile_n=512, tile_k=1024):
    """Pallas-backed NoisyLinear forward.

    training=True : y = x @ (W_mu + W_sigma * (eps_out ger eps_in))^T
                        + (b_mu + b_sigma * eps_out)
    training=False: y = x @ W_mu^T + b_mu   (only w_mu / b_mu are streamed)
    """
    out_dtype = x.dtype
    B, K = x.shape
    N = out_features
    Kp, Np = prep["w_mu_t"].shape
    cdt = prep["w_mu_t"].dtype

    Bp = _round_up(B, 8)
    # Cover the whole (padded) batch in one M-tile when it fits -> each weight
    # tile is streamed from HBM exactly once per forward.
    tm = _pick_tile(Bp, tile_m, 8)
    tn = _pick_tile(Np, tile_n, 128)
    tk = _pick_tile(Kp, tile_k, 128)

    # v7x has 2 TensorCores sharded over "parallel" axes: keep >=2 parallel
    # blocks when possible (harmless on single-TC v5e/v6e; weight volume is
    # unchanged since tn still divides Np).
    if Bp // tm == 1 and Np // tn == 1 and Np // 128 >= 2:
        tn = _pick_tile(Np, Np // 2, 128)

    x_p = jnp.pad(x.astype(cdt), ((0, Bp - B), (0, Kp - K)))

    grid = (Bp // tm, Np // tn, Kp // tk)
    x_spec = pl.BlockSpec((tm, tk), lambda i, j, k: (i, k))
    w_spec = pl.BlockSpec((tk, tn), lambda i, j, k: (k, j))
    krow_spec = pl.BlockSpec((1, tk), lambda i, j, k: (0, k))   # eps_in (lane-dense)
    nrow_spec = pl.BlockSpec((1, tn), lambda i, j, k: (0, j))   # eps_out / biases

    if training:
        kernel = _noisy_linear_train_kernel
        inputs = (x_p, prep["eps_in_row"], prep["w_mu_t"], prep["w_sigma_t"],
                  prep["eps_out_row"], prep["b_mu_row"], prep["b_sigma_row"])
        in_specs = [x_spec, krow_spec, w_spec, w_spec,
                    nrow_spec, nrow_spec, nrow_spec]
        scratch = [pltpu.VMEM((tm, tn), jnp.float32),
                   pltpu.VMEM((tm, tn), jnp.float32)]
    else:
        kernel = _noisy_linear_eval_kernel
        inputs = (x_p, prep["w_mu_t"], prep["b_mu_row"])
        in_specs = [x_spec, w_spec, nrow_spec]
        scratch = [pltpu.VMEM((tm, tn), jnp.float32)]

    out = pl.pallas_call(
        kernel,
        out_shape=jax.ShapeDtypeStruct((Bp, Np), out_dtype),
        grid_spec=pltpu.PrefetchScalarGridSpec(
            num_scalar_prefetch=0,
            grid=grid,
            in_specs=in_specs,
            out_specs=pl.BlockSpec((tm, tn), lambda i, j, k: (i, j)),
            scratch_shapes=scratch,
        ),
        compiler_params=pltpu.CompilerParams(
            dimension_semantics=("parallel", "parallel", "arbitrary"),
            vmem_limit_bytes=_vmem_budget_bytes(),
        ),
    )(*inputs)

    return out[:B, :N]


# ------------------------ parameter / noise setup -------------------------- #
def _scale_noise(key, size):
    # x.sign() * sqrt(|x|), matching NoisyLinear._scale_noise
    x = jax.random.normal(key, (size,), dtype=jnp.float32)
    return jnp.sign(x) * jnp.sqrt(jnp.abs(x))


def init_noisy_linear(key, in_features, out_features, std_init=0.5):
    # TODO(synk): torch RNG stream is not reproduced bit-for-bit; distributions match.
    k_wmu, k_bmu, k_ein, k_eout = jax.random.split(key, 4)
    mu_range = 1.0 / math.sqrt(in_features)

    w_mu = jax.random.uniform(k_wmu, (out_features, in_features),
                              minval=-mu_range, maxval=mu_range,
                              dtype=jnp.float32)
    w_sigma = jnp.full((out_features, in_features),
                       std_init / math.sqrt(in_features), dtype=jnp.float32)
    b_mu = jax.random.uniform(k_bmu, (out_features,),
                              minval=-mu_range, maxval=mu_range,
                              dtype=jnp.float32)
    b_sigma = jnp.full((out_features,),
                       std_init / math.sqrt(out_features), dtype=jnp.float32)

    # Factorized noise (weight_epsilon = outer(eps_out, eps_in),
    # bias_epsilon = eps_out) -- stored factorized so the kernel never streams
    # a full (out, in) epsilon matrix from HBM.
    eps_in = _scale_noise(k_ein, in_features)
    eps_out = _scale_noise(k_eout, out_features)

    return dict(w_mu=w_mu, w_sigma=w_sigma, b_mu=b_mu, b_sigma=b_sigma,
                eps_in=eps_in, eps_out=eps_out)


# --------------------------------- main ------------------------------------ #
if __name__ == "__main__":
    key = jax.random.PRNGKey(0)
    k_param, k_x = jax.random.split(key)

    batch, in_features, out_features = 8, 32, 64
    params = init_noisy_linear(k_param, in_features, out_features, std_init=0.5)
    x = jax.random.normal(k_x, (batch, in_features), dtype=jnp.float32)

    # One-time param prep (transpose / pad / cast hoisted out of the forward).
    prep_f32 = prepare_noisy_linear_params(params, compute_dtype=jnp.float32)

    # Pure-JAX reference (module semantics: weight_epsilon = eps_out ger eps_in).
    w_eps = jnp.outer(params["eps_out"], params["eps_in"])
    w_eff = params["w_mu"] + params["w_sigma"] * w_eps
    b_eff = params["b_mu"] + params["b_sigma"] * params["eps_out"]
    y_ref = x @ w_eff.T + b_eff
    y_eval_ref = x @ params["w_mu"].T + params["b_mu"]

    # Training mode (noisy weights / bias), f32.
    y = jax.block_until_ready(
        noisy_linear_forward(x, prep_f32, out_features, training=True))
    assert y.shape == (batch, out_features)
    assert jnp.allclose(y, y_ref, atol=1e-4, rtol=1e-4), "train-mode mismatch"

    # Eval fast path (only w_mu / b_mu streamed).
    y_eval = jax.block_until_ready(
        noisy_linear_forward(x, prep_f32, out_features, training=False))
    assert jnp.allclose(y_eval, y_eval_ref, atol=1e-4, rtol=1e-4), "eval mismatch"

    # bf16 weight storage (MXU bf16 operands, f32 accumulation) -- looser tol.
    prep_bf16 = prepare_noisy_linear_params(params, compute_dtype=jnp.bfloat16)
    y_bf16 = jax.block_until_ready(
        noisy_linear_forward(x, prep_bf16, out_features, training=True))
    assert jnp.allclose(y_bf16, y_ref, atol=5e-2, rtol=5e-2), "bf16 mismatch"

    print("KERNEL_OK")
</pallas_src>

<mosaic_0001>
module attributes {stable_mosaic.version = 11 : i64} {
  func.func @_noisy_linear_train_kernel(%arg0: i32, %arg1: i32, %arg2: i32, %arg3: memref<8x128xf32, #tpu.memory_space<vmem>>, %arg4: memref<1x128xf32, #tpu.memory_space<vmem>>, %arg5: memref<128x128xf32, #tpu.memory_space<vmem>>, %arg6: memref<128x128xf32, #tpu.memory_space<vmem>>, %arg7: memref<1x128xf32, #tpu.memory_space<vmem>>, %arg8: memref<1x128xf32, #tpu.memory_space<vmem>>, %arg9: memref<1x128xf32, #tpu.memory_space<vmem>>, %arg10: memref<8x128xf32, #tpu.memory_space<vmem>>, %arg11: memref<8x128xf32, #tpu.memory_space<vmem>>, %arg12: memref<8x128xf32, #tpu.memory_space<vmem>>) attributes {dimension_semantics = [#tpu.dimension_semantics<parallel>, #tpu.dimension_semantics<parallel>, #tpu.dimension_semantics<arbitrary>], iteration_bounds = array<i64: 1, 1, 1>, scalar_prefetch = 0 : i64, scratch_operands = 2 : i64, tpu.core_type = #tpu.core_type<tc>, window_params = [{transform_indices = @transform_0, window_bounds = array<i64: 8, 128>}, {transform_indices = @transform_1, window_bounds = array<i64: 1, 128>}, {transform_indices = @transform_2, window_bounds = array<i64: 128, 128>}, {transform_indices = @transform_3, window_bounds = array<i64: 128, 128>}, {transform_indices = @transform_4, window_bounds = array<i64: 1, 128>}, {transform_indices = @transform_5, window_bounds = array<i64: 1, 128>}, {transform_indices = @transform_6, window_bounds = array<i64: 1, 128>}, {transform_indices = @transform_7, window_bounds = array<i64: 8, 128>}]} {
    %c0_i32 = arith.constant 0 : i32
    %0 = arith.cmpi eq, %arg2, %c0_i32 : i32
    %1 = arith.extui %0 : i1 to i32
    %c0_i32_0 = arith.constant 0 : i32
    %2 = arith.cmpi ne, %1, %c0_i32_0 : i32
    scf.if %2 {
      %cst_19 = arith.constant 0.000000e+00 : f32
      %20 = vector.broadcast %cst_19 : f32 to vector<8x128xf32>
      %c0_20 = arith.constant 0 : index
      %c0_21 = arith.constant 0 : index
      %21 = vector.load %arg11[%c0_20, %c0_21] : memref<8x128xf32, #tpu.memory_space<vmem>>, vector<8x128xf32>
      tpu.vector_store %arg11[%c0_20, %c0_21], %20 {strides = array<i32>} : memref<8x128xf32, #tpu.memory_space<vmem>>, vector<8x128xf32>,
      %cst_22 = arith.constant 0.000000e+00 : f32
      %22 = vector.broadcast %cst_22 : f32 to vector<8x128xf32>
      %c0_23 = arith.constant 0 : index
      %c0_24 = arith.constant 0 : index
      %23 = vector.load %arg12[%c0_23, %c0_24] : memref<8x128xf32, #tpu.memory_space<vmem>>, vector<8x128xf32>
      tpu.vector_store %arg12[%c0_23, %c0_24], %22 {strides = array<i32>} : memref<8x128xf32, #tpu.memory_space<vmem>>, vector<8x128xf32>,
    } else {
    }
    %c0 = arith.constant 0 : index
    %c0_1 = arith.constant 0 : index
    %3 = vector.load %arg3[%c0, %c0_1] : memref<8x128xf32, #tpu.memory_space<vmem>>, vector<8x128xf32>
    %c0_2 = arith.constant 0 : index
    %c0_3 = arith.constant 0 : index
    %4 = vector.load %arg11[%c0_2, %c0_3] : memref<8x128xf32, #tpu.memory_space<vmem>>, vector<8x128xf32>
    %c0_4 = arith.constant 0 : index
    %c0_5 = arith.constant 0 : index
    %5 = vector.load %arg5[%c0_4, %c0_5] : memref<128x128xf32, #tpu.memory_space<vmem>>, vector<128x128xf32>
    %cst = arith.constant dense<0.000000e+00> : vector<8x128xf32>
    %6 = tpu.matmul %3, %5, %cst {dimension_numbers = #tpu.dot_dimension_numbers<[1], [0], [0], [1], [0, 0, 1, 1], [], []>} : vector<8x128xf32>, vector<128x128xf32>, vector<8x128xf32> -> vector<8x128xf32>
    %7 = arith.addf %4, %6 : vector<8x128xf32>
    %c0_6 = arith.constant 0 : index
    %c0_7 = arith.constant 0 : index
    %8 = vector.load %arg11[%c0_6, %c0_7] : memref<8x128xf32, #tpu.memory_space<vmem>>, vector<8x128xf32>
    tpu.vector_store %arg11[%c0_6, %c0_7], %7 {strides = array<i32>} : memref<8x128xf32, #tpu.memory_space<vmem>>, vector<8x128xf32>,
    %c0_8 = arith.constant 0 : index
    %c0_9 = arith.constant 0 : index
    %9 = vector.load %arg4[%c0_8, %c0_9] : memref<1x128xf32, #tpu.memory_space<vmem>>, vector<1x128xf32>
    %10 = vector.broadcast %9 : vector<1x128xf32> to vector<8x128xf32>
    %11 = arith.mulf %3, %10 : vector<8x128xf32>
    %c0_10 = arith.constant 0 : index
    %c0_11 = arith.constant 0 : index
    %12 = vector.load %arg12[%c0_10, %c0_11] : memref<8x128xf32, #tpu.memory_space<vmem>>, vector<8x128xf32>
    %c0_12 = arith.constant 0 : index
    %c0_13 = arith.constant 0 : index
    %13 = vector.load %arg6[%c0_12, %c0_13] : memref<128x128xf32, #tpu.memory_space<vmem>>, vector<128x128xf32>
    %cst_14 = arith.constant dense<0.000000e+00> : vector<8x128xf32>
    %14 = tpu.matmul %11, %13, %cst_14 {dimension_numbers = #tpu.dot_dimension_numbers<[1], [0], [0], [1], [0, 0, 1, 1], [], []>} : vector<8x128xf32>, vector<128x128xf32>, vector<8x128xf32> -> vector<8x128xf32>
    %15 = arith.addf %12, %14 : vector<8x128xf32>
    %c0_15 = arith.constant 0 : index
    %c0_16 = arith.constant 0 : index
    %16 = vector.load %arg12[%c0_15, %c0_16] : memref<8x128xf32, #tpu.memory_space<vmem>>, vector<8x128xf32>
    tpu.vector_store %arg12[%c0_15, %c0_16], %15 {strides = array<i32>} : memref<8x128xf32, #tpu.memory_space<vmem>>, vector<8x128xf32>,
    %c0_i32_17 = arith.constant 0 : i32
    %17 = arith.cmpi eq, %arg2, %c0_i32_17 : i32
    %18 = arith.extui %17 : i1 to i32
    %c0_i32_18 = arith.constant 0 : i32
    %19 = arith.cmpi ne, %18, %c0_i32_18 : i32
    scf.if %19 {
      %c0_19 = arith.constant 0 : index
      %c0_20 = arith.constant 0 : index
      %20 = vector.load %arg7[%c0_19, %c0_20] : memref<1x128xf32, #tpu.memory_space<vmem>>, vector<1x128xf32>
      %c0_21 = arith.constant 0 : index
      %c0_22 = arith.constant 0 : index
      %21 = vector.load %arg8[%c0_21, %c0_22] : memref<1x128xf32, #tpu.memory_space<vmem>>, vector<1x128xf32>
      %c0_23 = arith.constant 0 : index
      %c0_24 = arith.constant 0 : index
      %22 = vector.load %arg9[%c0_23, %c0_24] : memref<1x128xf32, #tpu.memory_space<vmem>>, vector<1x128xf32>
      %23 = arith.mulf %22, %20 : vector<1x128xf32>
      %24 = arith.addf %21, %23 : vector<1x128xf32>
      %c0_25 = arith.constant 0 : index
      %c0_26 = arith.constant 0 : index
      %25 = vector.load %arg11[%c0_25, %c0_26] : memref<8x128xf32, #tpu.memory_space<vmem>>, vector<8x128xf32>
      %c0_27 = arith.constant 0 : index
      %c0_28 = arith.constant 0 : index
      %26 = vector.load %arg12[%c0_27, %c0_28] : memref<8x128xf32, #tpu.memory_space<vmem>>, vector<8x128xf32>
      %27 = vector.broadcast %20 : vector<1x128xf32> to vector<8x128xf32>
      %28 = arith.mulf %26, %27 : vector<8x128xf32>
      %29 = arith.addf %25, %28 : vector<8x128xf32>
      %30 = vector.broadcast %24 : vector<1x128xf32> to vector<8x128xf32>
      %31 = arith.addf %29, %30 : vector<8x128xf32>
      %c0_29 = arith.constant 0 : index
      %c0_30 = arith.constant 0 : index
      %32 = vector.load %arg10[%c0_29, %c0_30] : memref<8x128xf32, #tpu.memory_space<vmem>>, vector<8x128xf32>
      tpu.vector_store %arg10[%c0_29, %c0_30], %31 {strides = array<i32>} : memref<8x128xf32, #tpu.memory_space<vmem>>, vector<8x128xf32>,
    } else {
    }
    return
  }
  func.func @transform_0(%arg0: i32, %arg1: i32, %arg2: i32) -> (i32, i32) {
    %c0_i32 = arith.constant 0 : i32
    return %arg0, %arg2 : i32, i32
  }
  func.func @transform_1(%arg0: i32, %arg1: i32, %arg2: i32) -> (i32, i32) {
    %c0_i32 = arith.constant 0 : i32
    %c0_i32_0 = arith.constant 0 : i32
    return %c0_i32, %arg2 : i32, i32
  }
  func.func @transform_2(%arg0: i32, %arg1: i32, %arg2: i32) -> (i32, i32) {
    %c0_i32 = arith.constant 0 : i32
    return %arg2, %arg1 : i32, i32
  }
  func.func @transform_3(%arg0: i32, %arg1: i32, %arg2: i32) -> (i32, i32) {
    %c0_i32 = arith.constant 0 : i32
    return %arg2, %arg1 : i32, i32
  }
  func.func @transform_4(%arg0: i32, %arg1: i32, %arg2: i32) -> (i32, i32) {
    %c0_i32 = arith.constant 0 : i32
    %c0_i32_0 = arith.constant 0 : i32
    return %c0_i32, %arg1 : i32, i32
  }
  func.func @transform_5(%arg0: i32, %arg1: i32, %arg2: i32) -> (i32, i32) {
    %c0_i32 = arith.constant 0 : i32
    %c0_i32_0 = arith.constant 0 : i32
    return %c0_i32, %arg1 : i32, i32
  }
  func.func @transform_6(%arg0: i32, %arg1: i32, %arg2: i32) -> (i32, i32) {
    %c0_i32 = arith.constant 0 : i32
    %c0_i32_0 = arith.constant 0 : i32
    return %c0_i32, %arg1 : i32, i32
  }
  func.func @transform_7(%arg0: i32, %arg1: i32, %arg2: i32) -> (i32, i32) {
    %c0_i32 = arith.constant 0 : i32
    return %arg0, %arg1 : i32, i32
  }
}

</mosaic_0001>

<bundles_post_ra>
// kernel: noisy_linear_forward.1
= control target key start
LH: loop header
LB: loop body
LE: loop exit
PB: predicated region body
PF: predicated region fallthrough
CT: control target
= control target key end

     0   :  { %12 = vsyncpa [#allocation5], 0  ;;  %s638_s0 = inlined_call_operand.vmem [shape: f32[8,128], index: 0, kind: input, shape index: {}]   ;;  %s639_s1 = inlined_call_operand.vmem [shape: f32[1,128], index: 1, kind: input, shape index: {}]   ;;  %s640_s2 = inlined_call_operand.hbm [shape: f32[128,128], index: 2, kind: input, shape index: {}]   ;;  %s641_s3 = inlined_call_operand.hbm [shape: f32[128,128], index: 3, kind: input, shape index: {}]   ;;  %s642_s4 = inlined_call_operand.vmem [shape: f32[1,128], index: 4, kind: input, shape index: {}]   ;;  %s643_s5 = inlined_call_operand.vmem [shape: f32[1,128], index: 5, kind: input, shape index: {}]   ;;  %s644_s6 = inlined_call_operand.vmem [shape: f32[1,128], index: 6, kind: input, shape index: {}]   ;;  %s645_s7 = inlined_call_operand.hbm [shape: f32[8,128], index: 7, kind: output, shape index: {}]  }
   0x1   :  { %13 = vsyncpa [#allocation8], 0 }
   0x2   :  { %14 = vsyncpa [#allocation6], 0  ;;  %s523_s24 = smov [#allocation4]   ;;  %s451_s28 = scalar_lea.hbm %s640_s2, 2048 }
   0x3   :  { %s24_s25 = sshll.u32 %s523_s24, 4  ;;  %p452_p0 = scmp.ne.s32.totalorder %s640_s2, %s451_s28  ;;  %s25_s25 = int_to_ptr.vmem [resolvable:$true] %s24_s25 }
   0x4   :  { %p455_p1 = scmp.lt.u32.totalorder %s451_s28, %s640_s2 }
   0x6   :  { %p457_p2 = pnand %p455_p1, %p452_p0 }
   0x8   :  { %460 = shalt.err (!%p457_p2)
}
   0x9   :  { %s461_s10 = scalar_lea.vmem %s25_s25, 2048  ;;  %p466_p4 = scmp.lt.s32.totalorder %s25_s25, %s25_s25 }
   0xa   :  { %p462_p3 = scmp.ne.s32.totalorder %s25_s25, %s461_s10  ;;  %p467_p5 = scmp.lt.s32.totalorder %s461_s10, %s461_s10 }
   0xc   :  { %p468_p6 = por %p467_p5, %p466_p4 }
   0xe   :  { %p469_p7 = pnand %p468_p6, %p462_p3 }
  0x10   :  { %472 = shalt.err (!%p469_p7)
}
  0x11   :  { %s524_s11 = smov 128   ;;  %s525_s12 = smov 8  }
  0x12   :  { %30 = dma.hbm_to_vmem [thread:$0]  %s640_s2, 2048, %s25_s25, [#allocation5], %s524_s11, %s524_s11, %s525_s12  }
  0x13   :  { %s526_s15 = smov [#allocation7]   ;;  %s473_s19 = scalar_lea.hbm %s641_s3, 2048 }
  0x14   :  { %s36_s16 = sshll.u32 %s526_s15, 4  ;;  %p474_p8 = scmp.ne.s32.totalorder %s641_s3, %s473_s19  ;;  %s37_s16 = int_to_ptr.vmem [resolvable:$true] %s36_s16 }
  0x15   :  { %p477_p9 = scmp.lt.u32.totalorder %s473_s19, %s641_s3 }
  0x17   :  { %p479_p10 = pnand %p477_p9, %p474_p8 }
  0x19   :  { %482 = shalt.err (!%p479_p10)
}
  0x1a   :  { %s483_s24 = scalar_lea.vmem %s37_s16, 2048  ;;  %p488_p12 = scmp.lt.s32.totalorder %s37_s16, %s37_s16 }
  0x1b   :  { %p484_p11 = scmp.ne.s32.totalorder %s37_s16, %s483_s24  ;;  %p489_p13 = scmp.lt.s32.totalorder %s483_s24, %s483_s24 }
  0x1d   :  { %p490_p0 = por %p489_p13, %p488_p12 }
  0x1f   :  { %p491_p1 = pnand %p490_p0, %p484_p11 }
  0x21   :  { %494 = shalt.err (!%p491_p1)
}
  0x22   :  { %42 = dma.hbm_to_vmem [thread:$0]  %s641_s3, 2048, %s37_s16, [#allocation8], %s524_s11, %s524_s11, %s525_s12  }
  0x23   :  { %517 = dma.done.wait [#allocation5], 2048  }
  0x24   :  { %518 = vsyncadd [#allocation5], 4294965248 }
  0x25   :  { %519 = dma.done.wait [#allocation8], 2048  }
  0x26   :  { %520 = vsyncadd [#allocation8], 4294965248  ;;  %v527_v0 = vmov 0.0|0.0   ;;  %vm528_vm0 = vmmov 0   ;;  %v529_v1 = vmov 0.0   ;;  %v160_v2 = vld [vmem:[#allocation7] sm:$0xff]  ;;  %v259_v53 = vlaneseq }
  0x27   :  { %419 = vmatprep.subr.bf16.mxu1 %v527_v0  ;;  %395 = vmatprep.subr.bf16.mxu0 %v527_v0  ;;  %v161_v3 = vld [vmem:[#allocation7 + $0x8] sm:$0xff]  ;;  %v63_v4 = vld [vmem:[#allocation4] sm:$0xff]  ;;  %v162_v7 = vld [vmem:[#allocation7 + $0x10] sm:$0xff]  ;;  %s530_s10 = smov [#allocation9]  }
  0x28   :  { %392 = vmatprep.mubr.msk.f32.mxu1 %vm528_vm0, %v529_v1  ;;  %357 = vmatprep.mubr.msk.f32.mxu0 %vm528_vm0, %v529_v1  ;;  %v420_v5 = vpack.c.bf16 %v161_v3, %v160_v2  ;;  %v64_v6 = vld [vmem:[#allocation4 + $0x8] sm:$0xff]  ;;  %v163_v8 = vld [vmem:[#allocation7 + $0x18] sm:$0xff]  ;;  %v65_v10 = vld [vmem:[#allocation4 + $0x10] sm:$0xff]  ;;  %v260_v54 = vshrl.u32 %v259_v53, 7 }
  0x29   :  { %v396_v9 = vpack.c.bf16 %v64_v6, %v63_v4  ;;  %v66_v11 = vld [vmem:[#allocation4 + $0x18] sm:$0xff]  ;;  %v423_v12 = vpack.c.bf16 %v163_v8, %v162_v7  ;;  %v164_v14 = vld [vmem:[#allocation7 + $0x20] sm:$0xff]  ;;  %v165_v15 = vld [vmem:[#allocation7 + $0x28] sm:$0xff] }
  0x2a   :  { %421 = vmatpush3.bf16.msra.mxu1 %v420_v5  ;;  %v399_v13 = vpack.c.bf16 %v66_v11, %v65_v10  ;;  %v67_v16 = vld [vmem:[#allocation4 + $0x20] sm:$0xff]  ;;  %v68_v17 = vld [vmem:[#allocation4 + $0x28] sm:$0xff]  ;;  %v426_v18 = vpack.c.bf16 %v165_v15, %v164_v14  ;;  %v166_v20 = vld [vmem:[#allocation7 + $0x30] sm:$0xff]  ;;  %v261_v58 = vsub.s32 0, %v260_v54 }
  0x2b   :  { %397 = vmatpush3.bf16.msra.mxu0 %v396_v9  ;;  %422 = vmatprep.subr.bf16.mxu1 %v527_v0  ;;  %v402_v19 = vpack.c.bf16 %v68_v17, %v67_v16  ;;  %v167_v21 = vld [vmem:[#allocation7 + $0x38] sm:$0xff]  ;;  %v69_v22 = vld [vmem:[#allocation4 + $0x30] sm:$0xff]  ;;  %v168_v26 = vld [vmem:[#allocation7 + $0x40] sm:$0xff] }
  0x2c   :  { %398 = vmatprep.subr.bf16.mxu0 %v527_v0  ;;  %v70_v23 = vld [vmem:[#allocation4 + $0x38] sm:$0xff]  ;;  %v429_v24 = vpack.c.bf16 %v167_v21, %v166_v20  ;;  %v169_v27 = vld [vmem:[#allocation7 + $0x48] sm:$0xff]  ;;  %v71_v28 = vld [vmem:[#allocation4 + $0x40] sm:$0xff] }
  0x2d   :  { %v405_v25 = vpack.c.bf16 %v70_v23, %v69_v22  ;;  %v72_v29 = vld [vmem:[#allocation4 + $0x48] sm:$0xff]  ;;  %v432_v30 = vpack.c.bf16 %v169_v27, %v168_v26  ;;  %v170_v32 = vld [vmem:[#allocation7 + $0x50] sm:$0xff]  ;;  %v171_v33 = vld [vmem:[#allocation7 + $0x58] sm:$0xff] }
  0x2e   :  { %424 = vmatpush3.bf16.msra.mxu1 %v423_v12  ;;  %v408_v31 = vpack.c.bf16 %v72_v29, %v71_v28  ;;  %v73_v34 = vld [vmem:[#allocation4 + $0x50] sm:$0xff]  ;;  %v74_v35 = vld [vmem:[#allocation4 + $0x58] sm:$0xff]  ;;  %v435_v36 = vpack.c.bf16 %v171_v33, %v170_v32  ;;  %v172_v38 = vld [vmem:[#allocation7 + $0x60] sm:$0xff] }
  0x2f   :  { %400 = vmatpush3.bf16.msra.mxu0 %v399_v13  ;;  %425 = vmatprep.subr.bf16.mxu1 %v527_v0  ;;  %v411_v37 = vpack.c.bf16 %v74_v35, %v73_v34  ;;  %v173_v39 = vld [vmem:[#allocation7 + $0x68] sm:$0xff]  ;;  %v75_v40 = vld [vmem:[#allocation4 + $0x60] sm:$0xff]  ;;  %v174_v44 = vld [vmem:[#allocation7 + $0x70] sm:$0xff] }
  0x30   :  { %401 = vmatprep.subr.bf16.mxu0 %v527_v0  ;;  %v76_v41 = vld [vmem:[#allocation4 + $0x68] sm:$0xff]  ;;  %v438_v42 = vpack.c.bf16 %v173_v39, %v172_v38  ;;  %v175_v45 = vld [vmem:[#allocation7 + $0x78] sm:$0xff]  ;;  %v77_v46 = vld [vmem:[#allocation4 + $0x70] sm:$0xff] }
  0x31   :  { %v414_v43 = vpack.c.bf16 %v76_v41, %v75_v40  ;;  %v78_v47 = vld [vmem:[#allocation4 + $0x78] sm:$0xff]  ;;  %v441_v48 = vpack.c.bf16 %v175_v45, %v174_v44  ;;  %v61_v49 = vld [vmem:[%s638_s0] sm:$0xff] }
  0x32   :  { %427 = vmatpush3.bf16.msra.mxu1 %v426_v18  ;;  %v290_v50 = vld [vmem:[%s639_s1] ss:$0 sm:$0xff]  ;;  %v417_v51 = vpack.c.bf16 %v78_v47, %v77_v46 }
  0x33   :  { %403 = vmatpush3.bf16.msra.mxu0 %v402_v19  ;;  %428 = vmatprep.subr.bf16.mxu1 %v527_v0  ;;  %v158_v52 = vmul.f32 %v290_v50, %v61_v49  ;;  %v251_v55 = vld [vmem:[%s642_s4] sm:$0x1]  ;;  %s280_s4 = sshll.u32 %s530_s10, 4  ;;  %s281_s4 = int_to_ptr.vmem [resolvable:$true] %s280_s4 }
  0x34   :  { %404 = vmatprep.subr.bf16.mxu0 %v527_v0  ;;  %v253_v56 = vld [vmem:[%s644_s6] sm:$0x1]  ;;  %v262_v60 = vrot.slane %v251_v55, %v261_v58  ;;  %s495_s6 = scalar_lea.vmem %s281_s4, 128  ;;  %p500_p3 = scmp.lt.s32.totalorder %s281_s4, %s281_s4 }
  0x35   :  { %v254_v57 = vmul.f32 %v253_v56, %v251_v55  ;;  %v252_v59 = vld [vmem:[%s643_s5] sm:$0x1]  ;;  %p496_p2 = scmp.ne.s32.totalorder %s281_s4, %s495_s6  ;;  %p501_p4 = scmp.lt.s32.totalorder %s495_s6, %s495_s6 }
  0x36   :  { %430 = vmatpush3.bf16.msra.mxu1 %v429_v24 }
  0x37   :  { %406 = vmatpush3.bf16.msra.mxu0 %v405_v25  ;;  %431 = vmatprep.subr.bf16.mxu1 %v527_v0  ;;  %v255_v61 = vadd.f32 %v254_v57, %v252_v59  ;;  %p502_p5 = por %p501_p4, %p500_p3 }
  0x38   :  { %407 = vmatprep.subr.bf16.mxu0 %v527_v0 }
  0x39   :  { %v270_v1 = vrot.slane %v255_v61, %v261_v58  ;;  %p503_p6 = pnand %p502_p5, %p496_p2 }
  0x3a   :  { %433 = vmatpush3.bf16.msra.mxu1 %v432_v30 }
  0x3b   :  { %409 = vmatpush3.bf16.msra.mxu0 %v408_v31  ;;  %434 = vmatprep.subr.bf16.mxu1 %v527_v0 }
  0x3c   :  { %410 = vmatprep.subr.bf16.mxu0 %v527_v0 }
  0x3e   :  { %436 = vmatpush3.bf16.msra.mxu1 %v435_v36 }
  0x3f   :  { %412 = vmatpush3.bf16.msra.mxu0 %v411_v37  ;;  %437 = vmatprep.subr.bf16.mxu1 %v527_v0 }
  0x40   :  { %413 = vmatprep.subr.bf16.mxu0 %v527_v0 }
  0x42   :  { %439 = vmatpush3.bf16.msra.mxu1 %v438_v42 }
  0x43   :  { %415 = vmatpush3.bf16.msra.mxu0 %v414_v43  ;;  %440 = vmatprep.subr.bf16.mxu1 %v527_v0 }
  0x44   :  { %416 = vmatprep.subr.bf16.mxu0 %v527_v0 }
  0x46   :  { %442 = vmatpush3.bf16.msra.mxu1 %v441_v48 }
  0x47   :  { %418 = vmatpush3.bf16.msra.mxu0 %v417_v51 }
  0x49   :  { %393 = vmatmul.mubr.f32.vlgmr.msra.gmra.mrb[0].mxu1 %v158_v52 }
  0x4a   :  { %358 = vmatmul.mubr.f32.vlgmr.msra.gmra.mrb[0].mxu0 %v61_v49 }
 0x11c   :  { %v242_v62 = vpop.f32.mrb[0].mxu1 }
 0x11d   :  { %v264_v63 = vmul.f32 %v262_v60, %v242_v62  ;;  %v145_v0 = vpop.f32.mrb[0].mxu0  ;;  %v394_v2 = vpop.f32.mrb[1].mxu1 }
 0x11e   :  { %v359_v3 = vpop.f32.mrb[1].mxu0 }
 0x11f   :  { %v265_v4 = vadd.f32 %v264_v63, %v145_v0 }
 0x121   :  { %v272_v5 = vadd.f32 %v270_v1, %v265_v4 }
 0x123   :  { %273 = vst [vmem:[#allocation9] sm:$0xff] %v272_v5 }
 0x124   :  { %506 = shalt.err (!%p503_p6)
}
 0x125   :  { %s507_s12 = scalar_lea.hbm %s645_s7, 128 }
 0x126   :  { %p508_p7 = scmp.ne.s32.totalorder %s645_s7, %s507_s12  ;;  %p511_p8 = scmp.lt.u32.totalorder %s507_s12, %s645_s7 }
 0x128   :  { %p513_p9 = pnand %p511_p8, %p508_p7 }
 0x12a   :  { %516 = shalt.err (!%p513_p9)
}
 0x12b   :  { %283 = dma.vmem_to_hbm [thread:$0]  %s281_s4, 128, %s645_s7, [#allocation6]  }
 0x12c   :  { %521 = dma.done.wait [#allocation6], 128  }
 0x12d   :  { %522 = vsyncadd [#allocation6], 4294967168 }
 0x12e   :  { %287 = vsyncpa [#allocation5], 1 }
 0x12f   :  { %288 = vsyncpa [#allocation8], 1 }
 0x130   :  { %289 = vsyncpa [#allocation6], 1 }

</bundles_post_ra>
